<compile_context>
chip_gen: v7x
topology: tpu7x:2x2x1
jax: 0.10.0
libtpu: 0.0.40
codegen_flags: <defaults>
</compile_context>

<pallas_src>
import jax
import jax.numpy as jnp
from jax.experimental import pallas as pl
from jax.experimental.pallas import tpu as pltpu

LN_EPS = 1e-5


def _round_up(x, m):
    return ((x + m - 1) // m) * m


def _head_kernel(reg_ref, gamma_ref, beta_ref, w1_ref, w2_ref, out_ref):
    # ---- pool over register tokens: unrolled f32 accumulate (no (tb,R,E) f32 temp) ----
    R = reg_ref.shape[1]
    acc = reg_ref[:, 0, :].astype(jnp.float32)
    for r in range(1, R):                       # R is small & static; VPU filler under DMA
        acc = acc + reg_ref[:, r, :].astype(jnp.float32)
    pooled = acc * jnp.float32(1.0 / R)         # mean as sum * (1/R)

    # ---- LayerNorm over E (biased variance, matches nn.LayerNorm); stats in f32 ----
    mu = jnp.mean(pooled, axis=-1, keepdims=True)
    diff = pooled - mu
    var = jnp.mean(diff * diff, axis=-1, keepdims=True)
    xn = diff * jax.lax.rsqrt(var + LN_EPS)
    xn = xn * gamma_ref[...].astype(jnp.float32) + beta_ref[...].astype(jnp.float32)

    # ---- Linear(E->C, bias=False) + Tanh : bf16 operands, f32 MXU accumulation ----
    h = jnp.tanh(jnp.dot(xn.astype(jnp.bfloat16), w1_ref[...],
                         preferred_element_type=jnp.float32))

    # Dropout(p=0.2) is identity at inference time.
    # TODO(synk): training-mode dropout (stochastic mask via pltpu.prng_random_bits) not emitted.

    # ---- Linear(C->C, bias=False) : bf16 operands, f32 accumulation ----
    out = jnp.dot(h.astype(jnp.bfloat16), w2_ref[...],
                  preferred_element_type=jnp.float32)
    out_ref[...] = out.astype(out_ref.dtype)


def _vmem_caps():
    """Return (budget_bytes, hard_cap_bytes), generation-aware with a safe fallback."""
    try:
        info = pltpu.get_tpu_info()
        cap = int(getattr(info, "vmem_capacity_bytes"))
        if cap > 0:
            return int(cap * 0.72), cap - (4 << 20)
    except Exception:
        pass
    # Unknown generation: assume the smallest VMEM (v7x, 64 MiB per TensorCore).
    return 46 * 1024 * 1024, 60 * 1024 * 1024


def _pick_block_b(B, R, E, C_pad, reg_itemsize, out_itemsize):
    """Pick a batch tile that keeps resident params + pipelined tiles inside VMEM."""
    budget, hard_cap = _vmem_caps()

    # The pipeliner may allocate 2 buffers per input BlockSpec even with a constant
    # index_map, so count every parameter twice (bf16 w1/w2, f32 gamma/beta).
    param_bytes = 2 * ((E * C_pad + C_pad * C_pad) * 2 + 2 * E * 4)

    def tile_bytes(tb):
        # double-buffered register input tile + double-buffered output tile
        return 2 * tb * R * E * reg_itemsize + 2 * tb * C_pad * out_itemsize

    if B <= 8:
        tb = B      # block == full batch dim: always layout-legal
        # TODO(synk): if params + a single-row tile still exceed VMEM, R/E tiling would be needed.
    else:
        tb = min((B // 8) * 8, 2048)               # large tiles amortize ~0.35us/grid-step
        if tb >= B and B >= 16:
            # Guarantee >=2 grid steps so the "parallel" batch axis can actually split
            # across the 2 TensorCores of a v7x chip (negligible cost on 1-TC parts).
            tb = min(tb, _round_up(pl.cdiv(B, 2), 8))
        while tb > 8 and param_bytes + tile_bytes(tb) > budget:
            tb = max(8, _round_up(tb // 2, 8))     # keep tb a multiple of 8

    need = param_bytes + tile_bytes(tb) + (2 << 20)    # + compiler internal scratch headroom
    vmem_limit = int(min(max(need, 16 << 20), hard_cap))
    return tb, vmem_limit


def classification_head(registers, gamma, beta, w1, w2, *, out_dtype=jnp.float32):
    """registers: (B, R, E); gamma/beta: (E,); w1: (E, C); w2: (C, C)  ->  (B, C)."""
    B, R, E = registers.shape
    C = w1.shape[1]

    # Lane-dense output / MXU-friendly N: pad the class dim to a multiple of 128 and
    # slice the result afterwards (zero-padding is exact: tanh(0)=0, zero w2 rows/cols).
    C_pad = max(_round_up(C, 128), 128)
    w1_bf = w1.astype(jnp.bfloat16)
    w2_bf = w2.astype(jnp.bfloat16)
    if C_pad != C:
        w1_bf = jnp.pad(w1_bf, ((0, 0), (0, C_pad - C)))
        w2_bf = jnp.pad(w2_bf, ((0, C_pad - C), (0, C_pad - C)))

    gamma2 = gamma.reshape(1, E).astype(jnp.float32)
    beta2 = beta.reshape(1, E).astype(jnp.float32)

    # Registers are streamed in their native dtype (a bf16 producer stays bf16, halving
    # the dominant HBM stream); no wrapper-side cast is added.
    tb, vmem_limit = _pick_block_b(B, R, E, C_pad,
                                   registers.dtype.itemsize,
                                   jnp.dtype(out_dtype).itemsize)
    grid = (pl.cdiv(B, tb),)

    out = pl.pallas_call(
        _head_kernel,
        out_shape=jax.ShapeDtypeStruct((B, C_pad), out_dtype),
        grid=grid,
        in_specs=[
            # batch-tiled register tokens (pipelined / double-buffered)
            pl.BlockSpec((tb, R, E), lambda b: (b, 0, 0)),
            # parameters: constant index_map -> fetched once, stay resident in VMEM
            pl.BlockSpec((1, E), lambda b: (0, 0)),
            pl.BlockSpec((1, E), lambda b: (0, 0)),
            pl.BlockSpec((E, C_pad), lambda b: (0, 0)),
            pl.BlockSpec((C_pad, C_pad), lambda b: (0, 0)),
        ],
        out_specs=pl.BlockSpec((tb, C_pad), lambda b: (b, 0)),
        compiler_params=pltpu.CompilerParams(
            dimension_semantics=("parallel",),     # v7x: shard batch tiles over 2 TCs
            vmem_limit_bytes=vmem_limit,
        ),
    )(registers, gamma2, beta2, w1_bf, w2_bf)

    return out[:, :C] if C_pad != C else out


def reference_head(registers, gamma, beta, w1, w2):
    """Pure-JAX reference with matching bf16 matmul operands / f32 accumulation."""
    pooled = jnp.mean(registers.astype(jnp.float32), axis=-2)
    mu = jnp.mean(pooled, axis=-1, keepdims=True)
    var = jnp.mean((pooled - mu) ** 2, axis=-1, keepdims=True)
    xn = (pooled - mu) * jax.lax.rsqrt(var + LN_EPS) * gamma + beta
    h = jnp.tanh(jnp.dot(xn.astype(jnp.bfloat16), w1.astype(jnp.bfloat16),
                         preferred_element_type=jnp.float32))
    return jnp.dot(h.astype(jnp.bfloat16), w2.astype(jnp.bfloat16),
                   preferred_element_type=jnp.float32)


if __name__ == "__main__":
    # Small shapes consistent with the module's forward (from_register=True path).
    B, R, E, C = 2, 8, 128, 200          # batch, register tokens, embedding_dim, output_classes
    # C=200 deliberately not a multiple of 128 to exercise the lane-dense padding path.

    key = jax.random.PRNGKey(0)
    k_x, k_reg, k_w1, k_w2 = jax.random.split(key, 4)

    # x is unused in the from_register=True path, constructed only to match the signature.
    x = jax.random.normal(k_x, (B, E, 16, 16), dtype=jnp.float32)
    registers = jax.random.normal(k_reg, (B, R, E), dtype=jnp.float32)

    # Deterministic parameter init (LayerNorm default: gamma=1, beta=0).
    gamma = jnp.ones((E,), dtype=jnp.float32)
    beta = jnp.zeros((E,), dtype=jnp.float32)
    w1 = jax.random.normal(k_w1, (E, C), dtype=jnp.float32) * 0.02   # Linear(E->C), stored (in, out)
    w2 = jax.random.normal(k_w2, (C, C), dtype=jnp.float32) * 0.02   # Linear(C->C), stored (in, out)

    out = classification_head(registers, gamma, beta, w1, w2)
    out = jax.block_until_ready(out)

    ref = reference_head(registers, gamma, beta, w1, w2)
    assert out.shape == (B, C), f"bad shape {out.shape}"
    assert jnp.allclose(out, ref, atol=5e-3, rtol=5e-3), \
        f"max abs err = {jnp.max(jnp.abs(out - ref))}"

    print("KERNEL_OK")
</pallas_src>

<mosaic_0001>
module attributes {stable_mosaic.version = 11 : i64} {
  func.func @_head_kernel(%arg0: i32, %arg1: memref<2x8x128xf32, #tpu.memory_space<vmem>>, %arg2: memref<1x128xf32, #tpu.memory_space<vmem>>, %arg3: memref<1x128xf32, #tpu.memory_space<vmem>>, %arg4: memref<128x256xbf16, #tpu.memory_space<vmem>>, %arg5: memref<256x256xbf16, #tpu.memory_space<vmem>>, %arg6: memref<2x256xf32, #tpu.memory_space<vmem>>) attributes {dimension_semantics = [#tpu.dimension_semantics<parallel>], iteration_bounds = array<i64: 1>, scalar_prefetch = 0 : i64, scratch_operands = 0 : i64, tpu.core_type = #tpu.core_type<tc>, window_params = [{transform_indices = @transform_0, window_bounds = array<i64: 2, 8, 128>}, {pipeline_mode = #tpu.pipeline_mode<synchronous>, transform_indices = @transform_1, window_bounds = array<i64: 1, 128>}, {pipeline_mode = #tpu.pipeline_mode<synchronous>, transform_indices = @transform_2, window_bounds = array<i64: 1, 128>}, {pipeline_mode = #tpu.pipeline_mode<synchronous>, transform_indices = @transform_3, window_bounds = array<i64: 128, 256>}, {pipeline_mode = #tpu.pipeline_mode<synchronous>, transform_indices = @transform_4, window_bounds = array<i64: 256, 256>}, {transform_indices = @transform_5, window_bounds = array<i64: 2, 256>}]} {
    %c0 = arith.constant 0 : index
    %c0_0 = arith.constant 0 : index
    %c0_1 = arith.constant 0 : index
    %0 = vector.load %arg1[%c0, %c0_0, %c0_1] : memref<2x8x128xf32, #tpu.memory_space<vmem>>, vector<2x1x128xf32>
    %1 = vector.shape_cast %0 : vector<2x1x128xf32> to vector<2x128xf32>
    %c0_2 = arith.constant 0 : index
    %c1 = arith.constant 1 : index
    %c0_3 = arith.constant 0 : index
    %2 = vector.load %arg1[%c0_2, %c1, %c0_3] : memref<2x8x128xf32, #tpu.memory_space<vmem>>, vector<2x1x128xf32>
    %3 = vector.shape_cast %2 : vector<2x1x128xf32> to vector<2x128xf32>
    %4 = arith.addf %1, %3 : vector<2x128xf32>
    %c0_4 = arith.constant 0 : index
    %c2 = arith.constant 2 : index
    %c0_5 = arith.constant 0 : index
    %5 = vector.load %arg1[%c0_4, %c2, %c0_5] : memref<2x8x128xf32, #tpu.memory_space<vmem>>, vector<2x1x128xf32>
    %6 = vector.shape_cast %5 : vector<2x1x128xf32> to vector<2x128xf32>
    %7 = arith.addf %4, %6 : vector<2x128xf32>
    %c0_6 = arith.constant 0 : index
    %c3 = arith.constant 3 : index
    %c0_7 = arith.constant 0 : index
    %8 = vector.load %arg1[%c0_6, %c3, %c0_7] : memref<2x8x128xf32, #tpu.memory_space<vmem>>, vector<2x1x128xf32>
    %9 = vector.shape_cast %8 : vector<2x1x128xf32> to vector<2x128xf32>
    %10 = arith.addf %7, %9 : vector<2x128xf32>
    %c0_8 = arith.constant 0 : index
    %c4 = arith.constant 4 : index
    %c0_9 = arith.constant 0 : index
    %11 = vector.load %arg1[%c0_8, %c4, %c0_9] : memref<2x8x128xf32, #tpu.memory_space<vmem>>, vector<2x1x128xf32>
    %12 = vector.shape_cast %11 : vector<2x1x128xf32> to vector<2x128xf32>
    %13 = arith.addf %10, %12 : vector<2x128xf32>
    %c0_10 = arith.constant 0 : index
    %c5 = arith.constant 5 : index
    %c0_11 = arith.constant 0 : index
    %14 = vector.load %arg1[%c0_10, %c5, %c0_11] : memref<2x8x128xf32, #tpu.memory_space<vmem>>, vector<2x1x128xf32>
    %15 = vector.shape_cast %14 : vector<2x1x128xf32> to vector<2x128xf32>
    %16 = arith.addf %13, %15 : vector<2x128xf32>
    %c0_12 = arith.constant 0 : index
    %c6 = arith.constant 6 : index
    %c0_13 = arith.constant 0 : index
    %17 = vector.load %arg1[%c0_12, %c6, %c0_13] : memref<2x8x128xf32, #tpu.memory_space<vmem>>, vector<2x1x128xf32>
    %18 = vector.shape_cast %17 : vector<2x1x128xf32> to vector<2x128xf32>
    %19 = arith.addf %16, %18 : vector<2x128xf32>
    %c0_14 = arith.constant 0 : index
    %c7 = arith.constant 7 : index
    %c0_15 = arith.constant 0 : index
    %20 = vector.load %arg1[%c0_14, %c7, %c0_15] : memref<2x8x128xf32, #tpu.memory_space<vmem>>, vector<2x1x128xf32>
    %21 = vector.shape_cast %20 : vector<2x1x128xf32> to vector<2x128xf32>
    %22 = arith.addf %19, %21 : vector<2x128xf32>
    %cst = arith.constant 1.250000e-01 : f32
    %23 = vector.broadcast %cst : f32 to vector<2x128xf32>
    %24 = arith.mulf %22, %23 : vector<2x128xf32>
    %cst_16 = arith.constant dense<0.000000e+00> : vector<2xf32>
    %25 = vector.multi_reduction <add>, %24, %cst_16 [1] : vector<2x128xf32> to vector<2xf32>
    %26 = vector.shape_cast %25 : vector<2xf32> to vector<2x1xf32>
    %cst_17 = arith.constant 1.280000e+02 : f32
    %27 = vector.broadcast %cst_17 : f32 to vector<2x1xf32>
    %28 = arith.divf %26, %27 : vector<2x1xf32>
    %29 = vector.broadcast %28 : vector<2x1xf32> to vector<2x128xf32>
    %30 = arith.subf %24, %29 : vector<2x128xf32>
    %31 = arith.mulf %30, %30 : vector<2x128xf32>
    %cst_18 = arith.constant dense<0.000000e+00> : vector<2xf32>
    %32 = vector.multi_reduction <add>, %31, %cst_18 [1] : vector<2x128xf32> to vector<2xf32>
    %33 = vector.shape_cast %32 : vector<2xf32> to vector<2x1xf32>
    %cst_19 = arith.constant 1.280000e+02 : f32
    %34 = vector.broadcast %cst_19 : f32 to vector<2x1xf32>
    %35 = arith.divf %33, %34 : vector<2x1xf32>
    %cst_20 = arith.constant 9.99999974E-6 : f32
    %36 = vector.broadcast %cst_20 : f32 to vector<2x1xf32>
    %37 = arith.addf %35, %36 : vector<2x1xf32>
    %38 = math.rsqrt %37 : vector<2x1xf32>
    %39 = vector.broadcast %38 : vector<2x1xf32> to vector<2x128xf32>
    %40 = arith.mulf %30, %39 : vector<2x128xf32>
    %c0_21 = arith.constant 0 : index
    %c0_22 = arith.constant 0 : index
    %41 = vector.load %arg2[%c0_21, %c0_22] : memref<1x128xf32, #tpu.memory_space<vmem>>, vector<1x128xf32>
    %42 = vector.broadcast %41 : vector<1x128xf32> to vector<2x128xf32>
    %43 = arith.mulf %40, %42 : vector<2x128xf32>
    %c0_23 = arith.constant 0 : index
    %c0_24 = arith.constant 0 : index
    %44 = vector.load %arg3[%c0_23, %c0_24] : memref<1x128xf32, #tpu.memory_space<vmem>>, vector<1x128xf32>
    %45 = vector.broadcast %44 : vector<1x128xf32> to vector<2x128xf32>
    %46 = arith.addf %43, %45 : vector<2x128xf32>
    %47 = arith.truncf %46 : vector<2x128xf32> to vector<2x128xbf16>
    %c0_25 = arith.constant 0 : index
    %c0_26 = arith.constant 0 : index
    %48 = vector.load %arg4[%c0_25, %c0_26] : memref<128x256xbf16, #tpu.memory_space<vmem>>, vector<128x256xbf16>
    %cst_27 = arith.constant dense<0.000000e+00> : vector<2x256xf32>
    %49 = tpu.matmul %47, %48, %cst_27 {dimension_numbers = #tpu.dot_dimension_numbers<[1], [0], [0], [1], [0, 0, 1, 1], [], []>} : vector<2x128xbf16>, vector<128x256xbf16>, vector<2x256xf32> -> vector<2x256xf32>
    %50 = math.tanh %49 : vector<2x256xf32>
    %51 = arith.truncf %50 : vector<2x256xf32> to vector<2x256xbf16>
    %c0_28 = arith.constant 0 : index
    %c0_29 = arith.constant 0 : index
    %52 = vector.load %arg5[%c0_28, %c0_29] : memref<256x256xbf16, #tpu.memory_space<vmem>>, vector<256x256xbf16>
    %cst_30 = arith.constant dense<0.000000e+00> : vector<2x256xf32>
    %53 = tpu.matmul %51, %52, %cst_30 {dimension_numbers = #tpu.dot_dimension_numbers<[1], [0], [0], [1], [0, 0, 1, 1], [], []>} : vector<2x256xbf16>, vector<256x256xbf16>, vector<2x256xf32> -> vector<2x256xf32>
    %c0_31 = arith.constant 0 : index
    %c0_32 = arith.constant 0 : index
    %54 = vector.load %arg6[%c0_31, %c0_32] : memref<2x256xf32, #tpu.memory_space<vmem>>, vector<2x256xf32>
    tpu.vector_store %arg6[%c0_31, %c0_32], %53 {strides = array<i32>} : memref<2x256xf32, #tpu.memory_space<vmem>>, vector<2x256xf32>,
    return
  }
  func.func @transform_0(%arg0: i32) -> (i32, i32, i32) {
    %c0_i32 = arith.constant 0 : i32
    %c0_i32_0 = arith.constant 0 : i32
    %c0_i32_1 = arith.constant 0 : i32
    return %arg0, %c0_i32, %c0_i32_0 : i32, i32, i32
  }
  func.func @transform_1(%arg0: i32) -> (i32, i32) {
    %c0_i32 = arith.constant 0 : i32
    %c0_i32_0 = arith.constant 0 : i32
    %c0_i32_1 = arith.constant 0 : i32
    return %c0_i32, %c0_i32_0 : i32, i32
  }
  func.func @transform_2(%arg0: i32) -> (i32, i32) {
    %c0_i32 = arith.constant 0 : i32
    %c0_i32_0 = arith.constant 0 : i32
    %c0_i32_1 = arith.constant 0 : i32
    return %c0_i32, %c0_i32_0 : i32, i32
  }
  func.func @transform_3(%arg0: i32) -> (i32, i32) {
    %c0_i32 = arith.constant 0 : i32
    %c0_i32_0 = arith.constant 0 : i32
    %c0_i32_1 = arith.constant 0 : i32
    return %c0_i32, %c0_i32_0 : i32, i32
  }
  func.func @transform_4(%arg0: i32) -> (i32, i32) {
    %c0_i32 = arith.constant 0 : i32
    %c0_i32_0 = arith.constant 0 : i32
    %c0_i32_1 = arith.constant 0 : i32
    return %c0_i32, %c0_i32_0 : i32, i32
  }
  func.func @transform_5(%arg0: i32) -> (i32, i32) {
    %c0_i32 = arith.constant 0 : i32
    %c0_i32_0 = arith.constant 0 : i32
    return %arg0, %c0_i32 : i32, i32
  }
}

</mosaic_0001>

<bundles_post_ra>
// kernel: tpu_custom_call.1
= control target key start
LH: loop header
LB: loop body
LE: loop exit
PB: predicated region body
PF: predicated region fallthrough
CT: control target
= control target key end

     0   :  { %10 = vsyncpa [#allocation3], 0  ;;  %s912_s0 = inlined_call_operand.hbm [shape: f32[2,8,128], index: 0, kind: input, shape index: {}]   ;;  %s913_s1 = inlined_call_operand.vmem [shape: f32[1,128], index: 1, kind: input, shape index: {}]   ;;  %s914_s2 = inlined_call_operand.vmem [shape: f32[1,128], index: 2, kind: input, shape index: {}]   ;;  %s915_s3 = inlined_call_operand.hbm [shape: bf16[128,256], index: 3, kind: input, shape index: {}]   ;;  %s916_s4 = inlined_call_operand.hbm [shape: bf16[256,256], index: 4, kind: input, shape index: {}]   ;;  %s917_s5 = inlined_call_operand.hbm [shape: f32[2,256], index: 5, kind: output, shape index: {}]  }
   0x1   :  { %11 = vsyncpa [#allocation6], 0 }
   0x2   :  { %12 = vsyncpa [#allocation4], 0  ;;  %s792_s18 = smov [#allocation5]   ;;  %s793_s20 = smov [#allocation2]  }
   0x3   :  { %s34_s19 = sshll.u32 %s792_s18, 4  ;;  %s18_s21 = sshll.u32 %s793_s20, 4  ;;  %s35_s19 = int_to_ptr.vmem [resolvable:$true] %s34_s19  ;;  %s829_s21 = int_to_ptr.vmem [resolvable:$true] %s18_s21 }
   0x4   :  { %s698_s24 = scalar_lea.hbm %s915_s3, 2048 }
   0x5   :  { %p699_p0 = scmp.ne.s32.totalorder %s915_s3, %s698_s24  ;;  %p702_p1 = scmp.lt.u32.totalorder %s698_s24, %s915_s3 }
   0x7   :  { %p704_p2 = pnand %p702_p1, %p699_p0 }
   0x9   :  { %707 = shalt.err (!%p704_p2)
}
   0xa   :  { %s708_s29 = scalar_lea.vmem %s35_s19, 2048  ;;  %p713_p4 = scmp.lt.s32.totalorder %s35_s19, %s35_s19 }
   0xb   :  { %p709_p3 = scmp.ne.s32.totalorder %s35_s19, %s708_s29  ;;  %p714_p5 = scmp.lt.s32.totalorder %s708_s29, %s708_s29 }
   0xd   :  { %p715_p6 = por %p714_p5, %p713_p4 }
   0xf   :  { %p716_p7 = pnand %p715_p6, %p709_p3 }
  0x11   :  { %719 = shalt.err (!%p716_p7)
}
  0x12   :  { %s794_s30 = smov 128   ;;  %s795_s6 = smov 8  }
  0x13   :  { %40 = dma.hbm_to_vmem [thread:$0]  %s915_s3, 2048, %s35_s19, [#allocation6], %s794_s30, %s794_s30, %s795_s6  }
  0x14   :  { %s720_s11 = scalar_lea.hbm %s912_s0, 256 }
  0x15   :  { %p721_p8 = scmp.ne.s32.totalorder %s912_s0, %s720_s11  ;;  %p724_p9 = scmp.lt.u32.totalorder %s720_s11, %s912_s0 }
  0x17   :  { %p726_p10 = pnand %p724_p9, %p721_p8 }
  0x19   :  { %729 = shalt.err (!%p726_p10)
}
  0x1a   :  { %s730_s16 = scalar_lea.vmem %s829_s21, 256  ;;  %p735_p12 = scmp.lt.s32.totalorder %s829_s21, %s829_s21 }
  0x1b   :  { %p731_p11 = scmp.ne.s32.totalorder %s829_s21, %s730_s16  ;;  %p736_p13 = scmp.lt.s32.totalorder %s730_s16, %s730_s16 }
  0x1d   :  { %p737_p0 = por %p736_p13, %p735_p12 }
  0x1f   :  { %p738_p1 = pnand %p737_p0, %p731_p11 }
  0x21   :  { %741 = shalt.err (!%p738_p1)
}
  0x22   :  { %24 = dma.hbm_to_vmem [thread:$0]  %s912_s0, 256, %s829_s21, [#allocation3], %s794_s30, %s794_s30, %s795_s6  }
  0x23   :  { %s796_s18 = smov [#allocation7]   ;;  %s742_s23 = scalar_lea.hbm %s916_s4, 4096 }
  0x24   :  { %s46_s19 = sshll.u32 %s796_s18, 4  ;;  %p743_p2 = scmp.ne.s32.totalorder %s916_s4, %s742_s23  ;;  %s47_s19 = int_to_ptr.vmem [resolvable:$true] %s46_s19 }
  0x25   :  { %p746_p3 = scmp.lt.u32.totalorder %s742_s23, %s916_s4 }
  0x27   :  { %p748_p4 = pnand %p746_p3, %p743_p2 }
  0x29   :  { %751 = shalt.err (!%p748_p4)
}
  0x2a   :  { %s752_s28 = scalar_lea.vmem %s47_s19, 4096  ;;  %p757_p6 = scmp.lt.s32.totalorder %s47_s19, %s47_s19 }
  0x2b   :  { %p753_p5 = scmp.ne.s32.totalorder %s47_s19, %s752_s28  ;;  %p758_p7 = scmp.lt.s32.totalorder %s752_s28, %s752_s28 }
  0x2d   :  { %p759_p8 = por %p758_p7, %p757_p6 }
  0x2f   :  { %p760_p9 = pnand %p759_p8, %p753_p5 }
  0x31   :  { %763 = shalt.err (!%p760_p9)
}
  0x32   :  { %52 = dma.hbm_to_vmem [thread:$0]  %s916_s4, 4096, %s47_s19, [#allocation6], %s794_s30, %s794_s30, %s795_s6  }
  0x33   :  { %786 = dma.done.wait [#allocation3], 256  }
  0x34   :  { %787 = vsyncadd [#allocation3], 4294967040 }
  0x35   :  { %788 = dma.done.wait [#allocation6], 6144  }
  0x36   :  { %789 = vsyncadd [#allocation6], 4294961152  ;;  %v63_v0 = vld [vmem:[#allocation2] sm:$0x1]  ;;  %v64_v1 = vld [vmem:[#allocation2 + $0x8] sm:$0x1] }
  0x37   :  { %v65_v2 = vld [vmem:[#allocation2 + $0x1] sm:$0x1]  ;;  %v66_v3 = vld [vmem:[#allocation2 + $0x9] sm:$0x1]  ;;  %v69_v5 = vld [vmem:[#allocation2 + $0x2] sm:$0x1] }
  0x38   :  { %v67_v4 = vadd.f32 %v65_v2, %v63_v0  ;;  %v70_v6 = vld [vmem:[#allocation2 + $0xa] sm:$0x1]  ;;  %v68_v7 = vadd.f32 %v66_v3, %v64_v1  ;;  %v73_v8 = vld [vmem:[#allocation2 + $0x3] sm:$0x1]  ;;  %v74_v10 = vld [vmem:[#allocation2 + $0xb] sm:$0x1] }
  0x39   :  { %v77_v12 = vld [vmem:[#allocation2 + $0x4] sm:$0x1]  ;;  %v78_v13 = vld [vmem:[#allocation2 + $0xc] sm:$0x1]  ;;  %v81_v14 = vld [vmem:[#allocation2 + $0x5] sm:$0x1] }
  0x3a   :  { %v71_v9 = vadd.f32 %v69_v5, %v67_v4  ;;  %v72_v11 = vadd.f32 %v70_v6, %v68_v7  ;;  %v82_v16 = vld [vmem:[#allocation2 + $0xd] sm:$0x1]  ;;  %v85_v18 = vld [vmem:[#allocation2 + $0x6] sm:$0x1]  ;;  %v86_v20 = vld [vmem:[#allocation2 + $0xe] sm:$0x1] }
  0x3b   :  { %v89_v22 = vld [vmem:[#allocation2 + $0x7] sm:$0x1]  ;;  %v90_v24 = vld [vmem:[#allocation2 + $0xf] sm:$0x1]  ;;  %vm98_vm0 = vcmask 1041409   ;;  %vm101_vm1 = vcmask 1041408  }
  0x3c   :  { %v75_v15 = vadd.f32 %v73_v8, %v71_v9  ;;  %v76_v17 = vadd.f32 %v74_v10, %v72_v11  ;;  %v620_v45 = vld [vmem:[#allocation5 + $0x4] ss:$8 sps:$4 sm:$0xff]   ;;  %v622_v46 = vld [vmem:[#allocation5] ss:$8 sps:$4 sm:$0xff]   ;;  %v623_v47 = vld [vmem:[#allocation5 + $0x14] ss:$8 sps:$4 sm:$0xff]  }
  0x3d   :  { %256 = vmatprep.subr.bf16.mxu0 %v620_v45  ;;  %v625_v48 = vld [vmem:[#allocation5 + $0x10] ss:$8 sps:$4 sm:$0xff]   ;;  %v626_v49 = vld [vmem:[#allocation5 + $0x24] ss:$8 sps:$4 sm:$0xff]   ;;  %v628_v50 = vld [vmem:[#allocation5 + $0x20] ss:$8 sps:$4 sm:$0xff]  }
  0x3e   :  { %v79_v19 = vadd.f32 %v77_v12, %v75_v15  ;;  %v80_v21 = vadd.f32 %v78_v13, %v76_v17  ;;  %257 = vmatpush1.bf16.msra.mxu0 %v622_v46  ;;  %v629_v51 = vld [vmem:[#allocation5 + $0x34] ss:$8 sps:$4 sm:$0xff]   ;;  %v631_v52 = vld [vmem:[#allocation5 + $0x30] ss:$8 sps:$4 sm:$0xff]   ;;  %v632_v53 = vld [vmem:[#allocation5 + $0x44] ss:$8 sps:$4 sm:$0xff]  }
  0x3f   :  { %258 = vmatprep.subr.bf16.mxu0 %v623_v47  ;;  %v634_v54 = vld [vmem:[#allocation5 + $0x40] ss:$8 sps:$4 sm:$0xff]   ;;  %v635_v55 = vld [vmem:[#allocation5 + $0x54] ss:$8 sps:$4 sm:$0xff]   ;;  %v637_v56 = vld [vmem:[#allocation5 + $0x50] ss:$8 sps:$4 sm:$0xff]  }
  0x40   :  { %v83_v23 = vadd.f32 %v81_v14, %v79_v19  ;;  %v84_v25 = vadd.f32 %v82_v16, %v80_v21  ;;  %v638_v57 = vld [vmem:[#allocation5 + $0x64] ss:$8 sps:$4 sm:$0xff]   ;;  %v797_v58 = vmov 0   ;;  %v640_v59 = vld [vmem:[#allocation5 + $0x60] ss:$8 sps:$4 sm:$0xff]  }
  0x41   :  { %288 = vmatprep.mubr.bf16.mxu0 %v797_v58  ;;  %v641_v60 = vld [vmem:[#allocation5 + $0x74] ss:$8 sps:$4 sm:$0xff]   ;;  %v643_v61 = vld [vmem:[#allocation5 + $0x70] ss:$8 sps:$4 sm:$0xff]   ;;  %v644_v62 = vld [vmem:[#allocation7 + $0x4] ss:$8 sps:$4 sm:$0xff]  }
  0x42   :  { %v87_v26 = vadd.f32 %v85_v18, %v83_v23  ;;  %v88_v27 = vadd.f32 %v86_v20, %v84_v25  ;;  %259 = vmatpush1.bf16.msra.mxu0 %v625_v48  ;;  %v646_v63 = vld [vmem:[#allocation7] ss:$8 sps:$4 sm:$0xff]   ;;  %v647_v0 = vld [vmem:[#allocation7 + $0x14] ss:$8 sps:$4 sm:$0xff]   ;;  %493 = vmatprep.subr.bf16.mxu1 %v644_v62  ;;  %v649_v1 = vld [vmem:[#allocation7 + $0x10] ss:$8 sps:$4 sm:$0xff]  }
  0x43   :  { %260 = vmatprep.subr.bf16.mxu0 %v626_v49  ;;  %494 = vmatpush1.bf16.msra.mxu1 %v646_v63  ;;  %v650_v2 = vld [vmem:[#allocation7 + $0x24] ss:$8 sps:$4 sm:$0xff]   ;;  %v652_v3 = vld [vmem:[#allocation7 + $0x20] ss:$8 sps:$4 sm:$0xff]   ;;  %v653_v4 = vld [vmem:[#allocation7 + $0x34] ss:$8 sps:$4 sm:$0xff]  }
  0x44   :  { %v91_v28 = vadd.f32 %v89_v22, %v87_v26  ;;  %v92_v29 = vadd.f32 %v90_v24, %v88_v27  ;;  %495 = vmatprep.subr.bf16.mxu1 %v647_v0  ;;  %v655_v5 = vld [vmem:[#allocation7 + $0x30] ss:$8 sps:$4 sm:$0xff]   ;;  %v656_v6 = vld [vmem:[#allocation7 + $0x44] ss:$8 sps:$4 sm:$0xff]   ;;  %v658_v7 = vld [vmem:[#allocation7 + $0x40] ss:$8 sps:$4 sm:$0xff]  }
  0x45   :  { %v659_v8 = vld [vmem:[#allocation7 + $0x54] ss:$8 sps:$4 sm:$0xff]   ;;  %v661_v9 = vld [vmem:[#allocation7 + $0x50] ss:$8 sps:$4 sm:$0xff]   ;;  %v662_v10 = vld [vmem:[#allocation7 + $0x64] ss:$8 sps:$4 sm:$0xff]  }
  0x46   :  { %v93_v30 = vmul.f32 0.125, %v91_v28  ;;  %v94_v31 = vmul.f32 0.125, %v92_v29  ;;  %261 = vmatpush1.bf16.msra.mxu0 %v628_v50  ;;  %v664_v11 = vld [vmem:[#allocation7 + $0x60] ss:$8 sps:$4 sm:$0xff]   ;;  %v665_v12 = vld [vmem:[#allocation7 + $0x74] ss:$8 sps:$4 sm:$0xff]  }
  0x47   :  { %262 = vmatprep.subr.bf16.mxu0 %v629_v51  ;;  %496 = vmatpush1.bf16.msra.mxu1 %v649_v1  ;;  %v667_v13 = vld [vmem:[#allocation7 + $0x70] ss:$8 sps:$4 sm:$0xff]   ;;  %v668_v14 = vld [vmem:[#allocation7 + $0x84] ss:$8 sps:$4 sm:$0xff]   ;;  %v670_v15 = vld [vmem:[#allocation7 + $0x80] ss:$8 sps:$4 sm:$0xff]  }
  0x48   :  { %v97_v32 = vrot.slane %v94_v31, 7  ;;  %497 = vmatprep.subr.bf16.mxu1 %v650_v2  ;;  %v671_v16 = vld [vmem:[#allocation7 + $0x94] ss:$8 sps:$4 sm:$0xff]   ;;  %v673_v17 = vld [vmem:[#allocation7 + $0x90] ss:$8 sps:$4 sm:$0xff]  }
  0x49   :  { %v674_v18 = vld [vmem:[#allocation7 + $0xa4] ss:$8 sps:$4 sm:$0xff]   ;;  %v676_v19 = vld [vmem:[#allocation7 + $0xa0] ss:$8 sps:$4 sm:$0xff]   ;;  %v677_v20 = vld [vmem:[#allocation7 + $0xb4] ss:$8 sps:$4 sm:$0xff]  }
  0x4a   :  { %v99_v33 = vsel %vm98_vm0, %v97_v32, %v93_v30  ;;  %263 = vmatpush1.bf16.msra.mxu0 %v631_v52  ;;  %v679_v21 = vld [vmem:[#allocation7 + $0xb0] ss:$8 sps:$4 sm:$0xff]   ;;  %v683_v45 = vld [vmem:[#allocation7 + $0xd4] ss:$8 sps:$4 sm:$0xff]   ;;  %v688_v47 = vld [vmem:[#allocation7 + $0xe0] ss:$8 sps:$4 sm:$0xff]  }
  0x4b   :  { %v102_v34 = vsel %vm101_vm1, %v99_v33, 0.0  ;;  %264 = vmatprep.subr.bf16.mxu0 %v632_v53  ;;  %498 = vmatpush1.bf16.msra.mxu1 %v652_v3  ;;  %v562_v26 = vld [vmem:[%s913_s1] ss:$0 sm:$0xff]  ;;  %v689_v48 = vld [vmem:[#allocation7 + $0xf4] ss:$8 sps:$4 sm:$0xff]   ;;  %s798_s1 = smov [#allocation8]  }
  0x4c   :  { %103 = vadd.xlane.f32.xlu0 %v102_v34  ;;  %499 = vmatprep.subr.bf16.mxu1 %v653_v4  ;;  %v563_v29 = vld [vmem:[%s914_s2] ss:$0 sm:$0xff]  ;;  %s552_s2 = sshll.u32 %s798_s1, 4  ;;  %s553_s2 = int_to_ptr.vmem [resolvable:$true] %s552_s2 }
  0x4d   :  { %v685_v46 = vld [vmem:[#allocation7 + $0xd0] ss:$8 sps:$4 sm:$0xff]   ;;  %s764_s7 = scalar_lea.vmem %s553_s2, 64  ;;  %p769_p11 = scmp.lt.s32.totalorder %s553_s2, %s553_s2 }
  0x4e   :  { %265 = vmatpush1.bf16.msra.mxu0 %v634_v54  ;;  %v691_v49 = vld [vmem:[#allocation7 + $0xf0] ss:$8 sps:$4 sm:$0xff]   ;;  %p765_p10 = scmp.ne.s32.totalorder %s553_s2, %s764_s7  ;;  %p770_p12 = scmp.lt.s32.totalorder %s764_s7, %s764_s7 }
  0x4f   :  { %266 = vmatprep.subr.bf16.mxu0 %v635_v55  ;;  %500 = vmatpush1.bf16.msra.mxu1 %v655_v5 }
  0x50   :  { %501 = vmatprep.subr.bf16.mxu1 %v656_v6  ;;  %p771_p13 = por %p770_p12, %p769_p11 }
  0x52   :  { %267 = vmatpush1.bf16.msra.mxu0 %v637_v56  ;;  %p772_p0 = pnand %p771_p13, %p765_p10 }
  0x53   :  { %268 = vmatprep.subr.bf16.mxu0 %v638_v57  ;;  %502 = vmatpush1.bf16.msra.mxu1 %v658_v7 }
  0x54   :  { %503 = vmatprep.subr.bf16.mxu1 %v659_v8 }
  0x56   :  { %269 = vmatpush1.bf16.msra.mxu0 %v640_v59 }
  0x57   :  { %270 = vmatprep.subr.bf16.mxu0 %v641_v60  ;;  %504 = vmatpush1.bf16.msra.mxu1 %v661_v9 }
  0x58   :  { %505 = vmatprep.subr.bf16.mxu1 %v662_v10 }
  0x5a   :  { %271 = vmatpush1.bf16.msra.mxu0 %v643_v61 }
  0x5b   :  { %506 = vmatpush1.bf16.msra.mxu1 %v664_v11 }
  0x5c   :  { %507 = vmatprep.subr.bf16.mxu1 %v665_v12 }
  0x5f   :  { %508 = vmatpush1.bf16.msra.mxu1 %v667_v13 }
  0x60   :  { %509 = vmatprep.subr.bf16.mxu1 %v668_v14 }
  0x63   :  { %510 = vmatpush1.bf16.msra.mxu1 %v670_v15 }
  0x64   :  { %511 = vmatprep.subr.bf16.mxu1 %v671_v16 }
  0x67   :  { %512 = vmatpush1.bf16.msra.mxu1 %v673_v17 }
  0x68   :  { %513 = vmatprep.subr.bf16.mxu1 %v674_v18 }
  0x6b   :  { %514 = vmatpush1.bf16.msra.mxu1 %v676_v19 }
  0x6c   :  { %515 = vmatprep.subr.bf16.mxu1 %v677_v20 }
  0x6f   :  { %516 = vmatpush1.bf16.msra.mxu1 %v679_v21 }
  0xd9   :  { %v104_v35 = vpop.xlane.xlu0 %103 }
  0xda   :  { %v106_v36 = vmul.f32 0.0078125, %v104_v35 }
  0xdc   :  { %v108_v37 = vrot.slane %v106_v36, 1  ;;  %v882_v38 = vsub.f32 %v93_v30, %v106_v36 }
  0xde   :  { %v884_v39 = vsub.f32 %v94_v31, %v108_v37  ;;  %v113_v41 = vmul.f32 %v882_v38, %v882_v38 }
  0xe0   :  { %v114_v40 = vmul.f32 %v884_v39, %v884_v39 }
  0xe2   :  { %v117_v42 = vrot.slane %v114_v40, 7 }
  0xe4   :  { %v118_v43 = vsel %vm98_vm0, %v117_v42, %v113_v41 }
  0xe5   :  { %v120_v44 = vsel %vm101_vm1, %v118_v43, 0.0 }
  0xe6   :  { %121 = vadd.xlane.f32.xlu0 %v120_v44  ;;  %v682_v44 = vld [vmem:[#allocation7 + $0xc0] ss:$8 sps:$4 sm:$0xff]  }
 0x173   :  { %v122_v22 = vpop.xlane.xlu0 %121 }
 0x174   :  { %v123_v23 = vmul.f32 0.0078125, %v122_v22 }
 0x176   :  { %v124_v24 = vadd.f32 1e-05, %v123_v23 }
 0x178   :  { %692 = vrsqrt.f32 %v124_v24 }
 0x182   :  { %v693_v25 = vpop.eup %692 }
 0x183   :  { %v127_v27 = vrot.slane %v693_v25, 1  ;;  %v130_v28 = vmul.f32 %v693_v25, %v882_v38  ;;  %v680_v38 = vld [vmem:[#allocation7 + $0xc4] ss:$8 sps:$4 sm:$0xff]  }
 0x184   :  { %517 = vmatprep.subr.bf16.mxu1 %v680_v38 }
 0x185   :  { %v131_v30 = vmul.f32 %v127_v27, %v884_v39  ;;  %v139_v31 = vmul.f32 %v562_v26, %v130_v28  ;;  %518 = vmatpush1.bf16.msra.mxu1 %v682_v44  ;;  %v686_v39 = vld [vmem:[#allocation7 + $0xe4] ss:$8 sps:$4 sm:$0xff]  }
 0x186   :  { %519 = vmatprep.subr.bf16.mxu1 %v683_v45 }
 0x187   :  { %v140_v32 = vmul.f32 %v562_v26, %v131_v30  ;;  %v148_v33 = vadd.f32 %v563_v29, %v139_v31 }
 0x189   :  { %v149_v34 = vadd.f32 %v563_v29, %v140_v32  ;;  %v150_v35 = vpack.c.bf16 %v148_v33, %v148_v33  ;;  %520 = vmatpush1.bf16.msra.mxu1 %v685_v46 }
 0x18a   :  { %521 = vmatprep.subr.bf16.mxu1 %v686_v39 }
 0x18b   :  { %v151_v36 = vpack.c.bf16 %v149_v34, %v149_v34  ;;  %v170_v40 = vunpack.c.l.b16 %v150_v35 }
 0x18d   :  { %v171_v37 = vunpack.c.l.b16 %v151_v36  ;;  %522 = vmatpush1.bf16.msra.mxu1 %v688_v47 }
 0x18e   :  { %523 = vmatprep.subr.bf16.mxu1 %v689_v48 }
 0x18f   :  { %v172_v41 = vrot.slane %v171_v37, 7 }
 0x191   :  { %v173_v42 = vsel %vm98_vm0, %v172_v41, %v170_v40  ;;  %524 = vmatpush1.bf16.msra.mxu1 %v691_v49 }
 0x192   :  { %v174_v43 = vpack.c.b16 %v173_v42, %v173_v42 }
 0x194   :  { %289 = vmatmul.mubr.bf16.vlgmr.msra.gmra.mrb[0].mxu0 %v174_v43 }
 0x267   :  { %v290_v50 = vpop.f32.mrb[0].mxu0 }
 0x268   :  { %694 = vtanh.f32 %v290_v50  ;;  %v292_v51 = vpop.f32.mrb[1].mxu0 }
 0x269   :  { %696 = vtanh.f32 %v292_v51  ;;  %v294_v52 = vpop.f32.mrb[2].mxu0 }
 0x26a   :  { %v295_v53 = vpop.f32.mrb[3].mxu0 }
 0x272   :  { %v695_v54 = vpop.eup %694 }
 0x273   :  { %v697_v55 = vpop.eup %696  ;;  %v299_v57 = vpack.c.bf16 %v695_v54, %v695_v54 }
 0x274   :  { %v300_v56 = vpack.c.bf16 %v697_v55, %v697_v55 }
 0x276   :  { %525 = vmatprep.mubr.bf16.mxu1 %v300_v56 }
 0x277   :  { %526 = vmatmul.mubr.bf16.vlgmr.msra.gmra.mrb[0].mxu1 %v299_v57 }
 0x34a   :  { %v527_v58 = vpop.f32.mrb[0].mxu1 }
 0x34b   :  { %v529_v59 = vpop.f32.mrb[1].mxu1 }
 0x34c   :  { %v536_v60 = vcombine.low %v527_v58, %v529_v59  ;;  %v531_v61 = vpop.f32.mrb[2].mxu1 }
 0x34d   :  { %v532_v62 = vpop.f32.mrb[3].mxu1 }
 0x34e   :  { %612 = vst.sshfl [vmem:[#allocation8] sm:$0x33 pattern:$0x76325410] %v536_v60 }
 0x34f   :  { %775 = shalt.err (!%p772_p0)
}
 0x350   :  { %s776_s10 = scalar_lea.hbm %s917_s5, 64 }
 0x351   :  { %p777_p1 = scmp.ne.s32.totalorder %s917_s5, %s776_s10  ;;  %p780_p2 = scmp.lt.u32.totalorder %s776_s10, %s917_s5 }
 0x353   :  { %p782_p3 = pnand %p780_p2, %p777_p1 }
 0x355   :  { %785 = shalt.err (!%p782_p3)
}
 0x356   :  { %555 = dma.vmem_to_hbm [thread:$0]  %s553_s2, 64, %s917_s5, [#allocation4]  }
 0x357   :  { %790 = dma.done.wait [#allocation4], 64  }
 0x358   :  { %791 = vsyncadd [#allocation4], 4294967232 }
 0x359   :  { %559 = vsyncpa [#allocation3], 1 }
 0x35a   :  { %560 = vsyncpa [#allocation6], 1 }
 0x35b   :  { %561 = vsyncpa [#allocation4], 1 }

</bundles_post_ra>
